<compile_context>
chip_gen: v5e
topology: v5e:2x2
jax: 0.10.0
libtpu: 0.0.40
codegen_flags: <defaults>
</compile_context>

<pallas_src>
import functools

import jax
import jax.numpy as jnp
from jax.experimental import pallas as pl
from jax.experimental.pallas import tpu as pltpu


def _round_up(x, m):
    return ((x + m - 1) // m) * m


def _divisor_tiles(total, base=128):
    """128-multiple divisors of `total` (a multiple of 128), descending."""
    m = total // base
    return [base * d for d in range(m, 0, -1) if m % d == 0]


def _vmem_budget_bytes():
    """~85% of per-core VMEM capacity (leaves compiler scratch headroom)."""
    cap = 64 * 1024 * 1024  # conservative v7x per-TC floor
    try:
        cap = int(getattr(pltpu.get_tpu_info(), "vmem_capacity_bytes", cap))
    except Exception:
        pass
    cap = min(cap, 128 * 1024 * 1024)
    return max(int(cap * 0.85), 32 * 1024 * 1024)


# --------------------------------------------------------------------------
# Kernels
# --------------------------------------------------------------------------
def _ffn_kernel_resident(x_ref, w1_ref, b1_ref, w2_ref, b2_ref, o_ref, *,
                         compute_dtype):
    # x_ref: (tile_m, d_model_p) in the input dtype (cast to bf16 on the VPU,
    # free under MXU slack). Weights are resident bf16 blocks (DMA'd once).
    x = x_ref[...].astype(compute_dtype)
    h = jnp.dot(x, w1_ref[...], preferred_element_type=jnp.float32)
    h = jnp.maximum(h + b1_ref[...], 0.0)
    # TODO(synk): training-mode dropout would mask `h` here via
    # pltpu.prng_seed + pltpu.stateful_bernoulli; eval mode -> identity.
    y = jnp.dot(h.astype(compute_dtype), w2_ref[...],
                preferred_element_type=jnp.float32)
    o_ref[...] = (y + b2_ref[...]).astype(o_ref.dtype)


def _ffn_kernel_ktiled_f32out(x_ref, w1_ref, b1_ref, w2_ref, b2_ref, o_ref, *,
                              compute_dtype):
    # d_ff chunked along the trailing grid axis; f32 output block is resident
    # across k and serves directly as the accumulator (no scratch, no copy).
    k = pl.program_id(1)

    @pl.when(k == 0)
    def _():
        o_ref[...] = jnp.broadcast_to(b2_ref[...], o_ref.shape)

    x = x_ref[...].astype(compute_dtype)
    h = jnp.dot(x, w1_ref[...], preferred_element_type=jnp.float32)
    h = jnp.maximum(h + b1_ref[...], 0.0)
    # TODO(synk): dropout is identity here (eval mode).
    o_ref[...] += jnp.dot(h.astype(compute_dtype), w2_ref[...],
                          preferred_element_type=jnp.float32)


def _ffn_kernel_ktiled_acc(x_ref, w1_ref, b1_ref, w2_ref, b2_ref, o_ref,
                           acc_ref, *, compute_dtype):
    # Same as above but with an f32 scratch accumulator, used only when the
    # output dtype is narrower than f32.
    k = pl.program_id(1)

    @pl.when(k == 0)
    def _():
        acc_ref[...] = jnp.broadcast_to(b2_ref[...], acc_ref.shape)

    x = x_ref[...].astype(compute_dtype)
    h = jnp.dot(x, w1_ref[...], preferred_element_type=jnp.float32)
    h = jnp.maximum(h + b1_ref[...], 0.0)
    acc_ref[...] += jnp.dot(h.astype(compute_dtype), w2_ref[...],
                            preferred_element_type=jnp.float32)

    @pl.when(k == pl.num_programs(1) - 1)
    def _():
        o_ref[...] = acc_ref[...].astype(o_ref.dtype)


# --------------------------------------------------------------------------
# Wrapper
# --------------------------------------------------------------------------
def positionwise_feed_forward(x, w1, b1, w2, b2, *, compute_dtype=jnp.bfloat16,
                              tile_m=None, tile_ff=None, force_ktiled=False):
    """x: [B, S, d_model]. Weights stored as (in, out) matrices:
    w1 (d_model, d_ff), b1 (d_ff,), w2 (d_ff, d_model), b2 (d_model,).
    Dropout is identity (inference / module.eval())."""
    B, S, d_model = x.shape
    d_ff = w1.shape[1]
    N = B * S
    out_dtype = x.dtype

    d_model_p = _round_up(d_model, 128)   # lane-dense last dims
    d_ff_p = _round_up(d_ff, 128)

    cbytes = jnp.dtype(compute_dtype).itemsize
    xbytes = jnp.dtype(x.dtype).itemsize
    obytes = jnp.dtype(out_dtype).itemsize
    budget = _vmem_budget_bytes()
    max_rows = _round_up(max(N, 1), 8)
    acc_out = jnp.dtype(out_dtype) != jnp.dtype(jnp.float32)

    tm_candidates = [1024, 512, 256, 128, 64, 32, 16, 8]

    def resident_bytes(tm):
        return (2 * 2 * d_model_p * d_ff_p * cbytes   # w1 + w2 (double-buffered)
                + 2 * (d_ff_p + d_model_p) * 4        # biases
                + 2 * tm * d_model_p * xbytes         # x tile (original dtype)
                + 2 * tm * d_model_p * obytes         # out tile
                + tm * d_ff_p * (4 + cbytes)          # h (f32 + bf16 copy)
                + tm * d_model_p * cbytes)            # in-kernel x bf16 cast

    def ktiled_bytes(tm, tf):
        return (2 * tm * d_model_p * xbytes
                + 2 * d_model_p * tf * cbytes
                + 2 * tf * d_model_p * cbytes
                + 2 * (tf + d_model_p) * 4
                + 2 * tm * d_model_p * obytes
                + (tm * d_model_p * 4 if acc_out else 0)
                + tm * tf * (4 + cbytes)
                + tm * d_model_p * cbytes)

    use_resident = (not force_ktiled) and resident_bytes(8) <= budget

    if use_resident:
        # ---- Fast path: weights resident in VMEM, 1-D grid over row tiles --
        if tile_m is None:
            tm = 8
            for cand in tm_candidates:
                cand = min(cand, max_rows)
                if resident_bytes(cand) <= budget:
                    tm = cand
                    break
        else:
            tm = min(_round_up(tile_m, 8), max_rows)
        d_ff_pad = d_ff_p
        N_p = _round_up(N, tm)
        grid = (N_p // tm,)
        in_specs = [
            pl.BlockSpec((tm, d_model_p), lambda i: (i, 0)),
            pl.BlockSpec((d_model_p, d_ff_pad), lambda i: (0, 0)),   # resident
            pl.BlockSpec((1, d_ff_pad), lambda i: (0, 0)),           # resident
            pl.BlockSpec((d_ff_pad, d_model_p), lambda i: (0, 0)),   # resident
            pl.BlockSpec((1, d_model_p), lambda i: (0, 0)),          # resident
        ]
        out_specs = pl.BlockSpec((tm, d_model_p), lambda i: (i, 0))
        scratch_shapes = ()
        kernel = functools.partial(_ffn_kernel_resident,
                                   compute_dtype=compute_dtype)
        dim_sem = ("parallel",)
        weight_streams = 1            # weights DMA'd exactly once
    else:
        # ---- Fallback: d_ff chunked along a trailing reduction axis --------
        tf_candidates = _divisor_tiles(d_ff_p)   # no over-padding of d_ff
        tm, tf = None, None
        for tm_c in tm_candidates:               # prefer large tile_m first:
            tm_c = min(tm_c, max_rows)           # intensity = tile_m FLOP/byte
            for tf_c in tf_candidates:
                if ktiled_bytes(tm_c, tf_c) <= budget:
                    tm, tf = tm_c, tf_c
                    break
            if tm is not None:
                break
        if tm is None:
            tm, tf = min(8, max_rows), 128
        if tile_m is not None:
            tm = min(_round_up(tile_m, 8), max_rows)
        if tile_ff is not None:
            tf = _round_up(tile_ff, 128)
        d_ff_pad = _round_up(d_ff_p, tf)
        N_p = _round_up(N, tm)
        grid = (N_p // tm, d_ff_pad // tf)
        in_specs = [
            pl.BlockSpec((tm, d_model_p), lambda i, k: (i, 0)),
            pl.BlockSpec((d_model_p, tf), lambda i, k: (0, k)),
            pl.BlockSpec((1, tf), lambda i, k: (0, k)),
            pl.BlockSpec((tf, d_model_p), lambda i, k: (k, 0)),
            pl.BlockSpec((1, d_model_p), lambda i, k: (0, 0)),
        ]
        out_specs = pl.BlockSpec((tm, d_model_p), lambda i, k: (i, 0))
        if acc_out:
            scratch_shapes = (pltpu.VMEM((tm, d_model_p), jnp.float32),)
            kernel = functools.partial(_ffn_kernel_ktiled_acc,
                                       compute_dtype=compute_dtype)
        else:
            scratch_shapes = ()
            kernel = functools.partial(_ffn_kernel_ktiled_f32out,
                                       compute_dtype=compute_dtype)
        dim_sem = ("parallel", "arbitrary")
        weight_streams = N_p // tm    # weights re-streamed per row tile

    # ---- Pad operands (x stays in its original dtype; cast happens in-kernel)
    x2 = jnp.pad(x.reshape(N, d_model),
                 ((0, N_p - N), (0, d_model_p - d_model)))
    w1p = jnp.pad(w1, ((0, d_model_p - d_model),
                       (0, d_ff_pad - d_ff))).astype(compute_dtype)
    b1p = jnp.pad(b1, (0, d_ff_pad - d_ff)).reshape(1, d_ff_pad).astype(jnp.float32)
    w2p = jnp.pad(w2, ((0, d_ff_pad - d_ff),
                       (0, d_model_p - d_model))).astype(compute_dtype)
    b2p = jnp.pad(b2, (0, d_model_p - d_model)).reshape(1, d_model_p).astype(jnp.float32)

    cost = pl.CostEstimate(
        flops=4 * N_p * d_model_p * d_ff_pad,
        transcendentals=0,
        bytes_accessed=int(
            N_p * d_model_p * (xbytes + obytes)
            + weight_streams * 2 * d_model_p * d_ff_pad * cbytes
            + weight_streams * (d_ff_pad + d_model_p) * 4),
    )

    out = pl.pallas_call(
        kernel,
        out_shape=jax.ShapeDtypeStruct((N_p, d_model_p), out_dtype),
        grid_spec=pltpu.PrefetchScalarGridSpec(
            num_scalar_prefetch=0,
            grid=grid,
            in_specs=in_specs,
            out_specs=out_specs,
            scratch_shapes=scratch_shapes,
        ),
        compiler_params=pltpu.CompilerParams(
            dimension_semantics=dim_sem,
            vmem_limit_bytes=int(budget),
        ),
        cost_estimate=cost,
    )(x2, w1p, b1p, w2p, b2p)

    return out[:N, :d_model].reshape(B, S, d_model)


def ffn_reference(x, w1, b1, w2, b2):
    h = jnp.maximum(jnp.einsum("bsd,df->bsf", x, w1) + b1, 0.0)
    return jnp.einsum("bsf,fd->bsd", h, w2) + b2


if __name__ == "__main__":
    batch, seq, d_model, d_ff = 2, 8, 32, 64

    key = jax.random.PRNGKey(0)
    kx, k1, kb1, k2, kb2 = jax.random.split(key, 5)

    x = jax.random.normal(kx, (batch, seq, d_model), dtype=jnp.float32)

    # nn.Linear(d_model, d_ff): weight (d_ff, d_model), bias (d_ff,).
    # We store weights transposed as (in, out) so the kernel does x @ W.
    bound1 = 1.0 / float(jnp.sqrt(d_model))
    w1 = jax.random.uniform(k1, (d_model, d_ff), jnp.float32, -bound1, bound1)
    b1 = jax.random.uniform(kb1, (d_ff,), jnp.float32, -bound1, bound1)
    bound2 = 1.0 / float(jnp.sqrt(d_ff))
    w2 = jax.random.uniform(k2, (d_ff, d_model), jnp.float32, -bound2, bound2)
    b2 = jax.random.uniform(kb2, (d_model,), jnp.float32, -bound2, bound2)

    # --- Fast path: weights resident in VMEM (small d_ff) -------------------
    y = jax.block_until_ready(positionwise_feed_forward(x, w1, b1, w2, b2))
    y_ref = ffn_reference(x, w1, b1, w2, b2)
    assert y.shape == (batch, seq, d_model)
    err = float(jnp.max(jnp.abs(y - y_ref)))
    assert err < 5e-2, f"resident path max abs error {err}"

    # --- Fallback path: d_ff chunked along the trailing reduction axis ------
    d_ff2 = 256
    w1b = jax.random.uniform(k1, (d_model, d_ff2), jnp.float32, -bound1, bound1)
    b1b = jax.random.uniform(kb1, (d_ff2,), jnp.float32, -bound1, bound1)
    bound2b = 1.0 / float(jnp.sqrt(d_ff2))
    w2b = jax.random.uniform(k2, (d_ff2, d_model), jnp.float32, -bound2b, bound2b)
    b2b = jax.random.uniform(kb2, (d_model,), jnp.float32, -bound2b, bound2b)

    y2 = jax.block_until_ready(
        positionwise_feed_forward(x, w1b, b1b, w2b, b2b,
                                  force_ktiled=True, tile_ff=128))
    y2_ref = ffn_reference(x, w1b, b1b, w2b, b2b)
    err2 = float(jnp.max(jnp.abs(y2 - y2_ref)))
    assert err2 < 5e-2, f"k-tiled path max abs error {err2}"

    print("KERNEL_OK")
</pallas_src>

<mosaic_0001>
module attributes {stable_mosaic.version = 11 : i64} {
  func.func @_ffn_kernel_resident(%arg0: i32, %arg1: memref<16x128xf32, #tpu.memory_space<vmem>>, %arg2: memref<128x128xbf16, #tpu.memory_space<vmem>>, %arg3: memref<1x128xf32, #tpu.memory_space<vmem>>, %arg4: memref<128x128xbf16, #tpu.memory_space<vmem>>, %arg5: memref<1x128xf32, #tpu.memory_space<vmem>>, %arg6: memref<16x128xf32, #tpu.memory_space<vmem>>) attributes {dimension_semantics = [#tpu.dimension_semantics<parallel>], iteration_bounds = array<i64: 1>, scalar_prefetch = 0 : i64, scratch_operands = 0 : i64, tpu.core_type = #tpu.core_type<tc>, window_params = [{transform_indices = @transform_0, window_bounds = array<i64: 16, 128>}, {pipeline_mode = #tpu.pipeline_mode<synchronous>, transform_indices = @transform_1, window_bounds = array<i64: 128, 128>}, {pipeline_mode = #tpu.pipeline_mode<synchronous>, transform_indices = @transform_2, window_bounds = array<i64: 1, 128>}, {pipeline_mode = #tpu.pipeline_mode<synchronous>, transform_indices = @transform_3, window_bounds = array<i64: 128, 128>}, {pipeline_mode = #tpu.pipeline_mode<synchronous>, transform_indices = @transform_4, window_bounds = array<i64: 1, 128>}, {transform_indices = @transform_5, window_bounds = array<i64: 16, 128>}]} {
    %c0 = arith.constant 0 : index
    %c0_0 = arith.constant 0 : index
    %0 = vector.load %arg1[%c0, %c0_0] : memref<16x128xf32, #tpu.memory_space<vmem>>, vector<16x128xf32>
    %1 = arith.truncf %0 : vector<16x128xf32> to vector<16x128xbf16>
    %c0_1 = arith.constant 0 : index
    %c0_2 = arith.constant 0 : index
    %2 = vector.load %arg2[%c0_1, %c0_2] : memref<128x128xbf16, #tpu.memory_space<vmem>>, vector<128x128xbf16>
    %cst = arith.constant dense<0.000000e+00> : vector<16x128xf32>
    %3 = tpu.matmul %1, %2, %cst {dimension_numbers = #tpu.dot_dimension_numbers<[1], [0], [0], [1], [0, 0, 1, 1], [], []>} : vector<16x128xbf16>, vector<128x128xbf16>, vector<16x128xf32> -> vector<16x128xf32>
    %c0_3 = arith.constant 0 : index
    %c0_4 = arith.constant 0 : index
    %4 = vector.load %arg3[%c0_3, %c0_4] : memref<1x128xf32, #tpu.memory_space<vmem>>, vector<1x128xf32>
    %5 = vector.broadcast %4 : vector<1x128xf32> to vector<16x128xf32>
    %6 = arith.addf %3, %5 : vector<16x128xf32>
    %cst_5 = arith.constant 0.000000e+00 : f32
    %7 = vector.broadcast %cst_5 : f32 to vector<16x128xf32>
    %8 = arith.maximumf %6, %7 : vector<16x128xf32>
    %9 = arith.truncf %8 : vector<16x128xf32> to vector<16x128xbf16>
    %c0_6 = arith.constant 0 : index
    %c0_7 = arith.constant 0 : index
    %10 = vector.load %arg4[%c0_6, %c0_7] : memref<128x128xbf16, #tpu.memory_space<vmem>>, vector<128x128xbf16>
    %cst_8 = arith.constant dense<0.000000e+00> : vector<16x128xf32>
    %11 = tpu.matmul %9, %10, %cst_8 {dimension_numbers = #tpu.dot_dimension_numbers<[1], [0], [0], [1], [0, 0, 1, 1], [], []>} : vector<16x128xbf16>, vector<128x128xbf16>, vector<16x128xf32> -> vector<16x128xf32>
    %c0_9 = arith.constant 0 : index
    %c0_10 = arith.constant 0 : index
    %12 = vector.load %arg5[%c0_9, %c0_10] : memref<1x128xf32, #tpu.memory_space<vmem>>, vector<1x128xf32>
    %13 = vector.broadcast %12 : vector<1x128xf32> to vector<16x128xf32>
    %14 = arith.addf %11, %13 : vector<16x128xf32>
    %c0_11 = arith.constant 0 : index
    %c0_12 = arith.constant 0 : index
    %15 = vector.load %arg6[%c0_11, %c0_12] : memref<16x128xf32, #tpu.memory_space<vmem>>, vector<16x128xf32>
    tpu.vector_store %arg6[%c0_11, %c0_12], %14 {strides = array<i32>} : memref<16x128xf32, #tpu.memory_space<vmem>>, vector<16x128xf32>,
    return
  }
  func.func @transform_0(%arg0: i32) -> (i32, i32) {
    %c0_i32 = arith.constant 0 : i32
    %c0_i32_0 = arith.constant 0 : i32
    return %arg0, %c0_i32 : i32, i32
  }
  func.func @transform_1(%arg0: i32) -> (i32, i32) {
    %c0_i32 = arith.constant 0 : i32
    %c0_i32_0 = arith.constant 0 : i32
    %c0_i32_1 = arith.constant 0 : i32
    return %c0_i32, %c0_i32_0 : i32, i32
  }
  func.func @transform_2(%arg0: i32) -> (i32, i32) {
    %c0_i32 = arith.constant 0 : i32
    %c0_i32_0 = arith.constant 0 : i32
    %c0_i32_1 = arith.constant 0 : i32
    return %c0_i32, %c0_i32_0 : i32, i32
  }
  func.func @transform_3(%arg0: i32) -> (i32, i32) {
    %c0_i32 = arith.constant 0 : i32
    %c0_i32_0 = arith.constant 0 : i32
    %c0_i32_1 = arith.constant 0 : i32
    return %c0_i32, %c0_i32_0 : i32, i32
  }
  func.func @transform_4(%arg0: i32) -> (i32, i32) {
    %c0_i32 = arith.constant 0 : i32
    %c0_i32_0 = arith.constant 0 : i32
    %c0_i32_1 = arith.constant 0 : i32
    return %c0_i32, %c0_i32_0 : i32, i32
  }
  func.func @transform_5(%arg0: i32) -> (i32, i32) {
    %c0_i32 = arith.constant 0 : i32
    %c0_i32_0 = arith.constant 0 : i32
    return %arg0, %c0_i32 : i32, i32
  }
}

</mosaic_0001>

<bundles_post_ra>
// kernel: tpu_custom_call.1
= control target key start
LH: loop header
LB: loop body
LE: loop exit
PB: predicated region body
PF: predicated region fallthrough
CT: control target
= control target key end

     0   :  { %10 = vsyncpa [#allocation3], 0  ;;  %s514_s0 = inlined_call_operand.hbm [shape: f32[16,128], index: 0, kind: input, shape index: {}]   ;;  %s515_s1 = inlined_call_operand.hbm [shape: bf16[128,128], index: 1, kind: input, shape index: {}]   ;;  %s516_s2 = inlined_call_operand.vmem [shape: f32[1,128], index: 2, kind: input, shape index: {}]   ;;  %s517_s3 = inlined_call_operand.hbm [shape: bf16[128,128], index: 3, kind: input, shape index: {}]   ;;  %s518_s4 = inlined_call_operand.vmem [shape: f32[1,128], index: 4, kind: input, shape index: {}]   ;;  %s519_s5 = inlined_call_operand.hbm [shape: f32[16,128], index: 5, kind: output, shape index: {}]  }
   0x1   :  { %11 = vsyncpa [#allocation6], 0  ;;  %s30_s20 = sshll.u32 %s515_s1, 4  ;;  %s31_s20 = int_to_ptr.hbm [resolvable:$true] %s30_s20 }
   0x2   :  { %12 = vsyncpa [#allocation4], 0  ;;  %s452_s21 = smov [#allocation5]   ;;  %s17_s25 = sshll.u32 %s514_s0, 4  ;;  %s18_s25 = int_to_ptr.hbm [resolvable:$true] %s17_s25 }
   0x3   :  { %s32_s22 = sshll.u32 %s452_s21, 4  ;;  %s453_s26 = smov 64   ;;  %s33_s22 = int_to_ptr.vmem [resolvable:$true] %s32_s22 }
   0x4   :  { %s454_s27 = smov 4   ;;  %s455_s28 = smov [#allocation2]  }
   0x5   :  { %38 = dma.hbm_to_vmem [thread:$0]  %s31_s20, 1024, %s33_s22, [#allocation6], %s453_s26, %s453_s26, %s454_s27  }
   0x6   :  { %s19_s29 = sshll.u32 %s455_s28, 4  ;;  %s456_s30 = smov 128   ;;  %s20_s29 = int_to_ptr.vmem [resolvable:$true] %s19_s29 }
   0x7   :  { %s457_s6 = smov 8   ;;  %s45_s8 = sshll.u32 %s517_s3, 4  ;;  %s46_s8 = int_to_ptr.hbm [resolvable:$true] %s45_s8 }
   0x8   :  { %25 = dma.hbm_to_vmem [thread:$0]  %s18_s25, 256, %s20_s29, [#allocation3], %s456_s30, %s456_s30, %s457_s6  }
   0x9   :  { %s458_s9 = smov [#allocation7]  }
   0xa   :  { %s47_s0 = sshll.u32 %s458_s9, 4  ;;  %s48_s0 = int_to_ptr.vmem [resolvable:$true] %s47_s0 }
   0xb   :  { %53 = dma.hbm_to_vmem [thread:$0]  %s46_s8, 1024, %s48_s0, [#allocation6], %s453_s26, %s453_s26, %s454_s27  }
   0xc   :  { %446 = dma.done.wait [#allocation3], 256  }
   0xd   :  { %447 = vsyncadd [#allocation3], 4294967040 }
   0xe   :  { %448 = dma.done.wait [#allocation6], 2048  }
   0xf   :  { %449 = vsyncadd [#allocation6], 4294965248  ;;  %v331_v0 = vld [vmem:[#allocation5 + $0x38] sm:$0xff]  ;;  %v330_v1 = vld [vmem:[#allocation5 + $0x30] sm:$0xff]  ;;  %s459_s13 = smov [#allocation8]  }
  0x10   :  { %139 = vmatpush.bf16.msra.mxu0 %v331_v0  ;;  %v339_v2 = vld [vmem:[#allocation7 + $0x38] sm:$0xff]  ;;  %v338_v3 = vld [vmem:[#allocation7 + $0x30] sm:$0xff]  ;;  %v329_v4 = vld [vmem:[#allocation5 + $0x28] sm:$0xff]  ;;  %s244_s14 = sshll.u32 %s459_s13, 4  ;;  %s245_s14 = int_to_ptr.vmem [resolvable:$true] %s244_s14 }
  0x11   :  { %224 = vmatpush.bf16.msra.mxu1 %v339_v2  ;;  %v337_v5 = vld [vmem:[#allocation7 + $0x28] sm:$0xff]  ;;  %v328_v6 = vld [vmem:[#allocation5 + $0x20] sm:$0xff]  ;;  %v327_v8 = vld [vmem:[#allocation5 + $0x18] sm:$0xff] }
  0x12   :  { %v336_v7 = vld [vmem:[#allocation7 + $0x20] sm:$0xff]  ;;  %v326_v9 = vld [vmem:[#allocation5 + $0x10] sm:$0xff]  ;;  %v325_v10 = vld [vmem:[#allocation5 + $0x8] sm:$0xff] }
  0x13   :  { %v324_v11 = vld [vmem:[#allocation5] sm:$0xff]  ;;  %v68_v12 = vld [vmem:[#allocation2] sm:$0xff]  ;;  %v69_v13 = vld [vmem:[#allocation2 + $0x8] sm:$0xff] }
  0x14   :  { %140 = vmatpush.bf16.msra.mxu0 %v330_v1  ;;  %v70_v14 = vpack.c.bf16 %v69_v13, %v68_v12  ;;  %v335_v15 = vld [vmem:[#allocation7 + $0x18] sm:$0xff]  ;;  %v334_v16 = vld [vmem:[#allocation7 + $0x10] sm:$0xff]  ;;  %v333_v17 = vld [vmem:[#allocation7 + $0x8] sm:$0xff] }
  0x15   :  { %225 = vmatpush.bf16.msra.mxu1 %v338_v3  ;;  %v332_v18 = vld [vmem:[#allocation7] sm:$0xff]  ;;  %v348_v20 = vld [vmem:[%s516_s2] ss:$0 sm:$0xff]  ;;  %s246_s2 = sshll.u32 %s519_s5, 4  ;;  %s247_s2 = int_to_ptr.hbm [resolvable:$true] %s246_s2 }
  0x16   :  { %v349_v27 = vld [vmem:[%s518_s4] ss:$0 sm:$0xff] }
  0x18   :  { %141 = vmatpush.bf16.msra.mxu0 %v329_v4 }
  0x19   :  { %226 = vmatpush.bf16.msra.mxu1 %v337_v5 }
  0x1c   :  { %142 = vmatpush.bf16.msra.mxu0 %v328_v6 }
  0x1d   :  { %227 = vmatpush.bf16.msra.mxu1 %v336_v7 }
  0x20   :  { %143 = vmatpush.bf16.msra.mxu0 %v327_v8 }
  0x21   :  { %228 = vmatpush.bf16.msra.mxu1 %v335_v15 }
  0x24   :  { %144 = vmatpush.bf16.msra.mxu0 %v326_v9 }
  0x25   :  { %229 = vmatpush.bf16.msra.mxu1 %v334_v16 }
  0x28   :  { %145 = vmatpush.bf16.msra.mxu0 %v325_v10 }
  0x29   :  { %230 = vmatpush.bf16.msra.mxu1 %v333_v17 }
  0x2c   :  { %146 = vmatpush.bf16.msra.mxu0 %v324_v11 }
  0x2d   :  { %231 = vmatpush.bf16.msra.mxu1 %v332_v18 }
  0x2f   :  { %147 = vmatmul.bf16.vlgmr.msra.gmra.mxu0 %v70_v14 }
  0xac   :  { %v148_v19 = vpop.f32.mrf.mxu0 }
  0xad   :  { %v149_v21 = vadd.f32 %v348_v20, %v148_v19 }
  0xaf   :  { %v153_v24 = vmax.f32 %v149_v21, 0.0 }
  0xb4   :  { %v150_v22 = vpop.f32.mrf.mxu0 }
  0xb5   :  { %v151_v23 = vadd.f32 %v348_v20, %v150_v22 }
  0xb7   :  { %v154_v25 = vmax.f32 %v151_v23, 0.0 }
  0xb9   :  { %v155_v26 = vpack.c.bf16 %v154_v25, %v153_v24 }
  0xbb   :  { %232 = vmatmul.bf16.vlgmr.msra.gmra.mxu1 %v155_v26 }
 0x138   :  { %v233_v28 = vpop.f32.mrf.mxu1 }
 0x139   :  { %v234_v29 = vadd.f32 %v349_v27, %v233_v28 }
 0x13b   :  { %238 = vst [vmem:[#allocation8] sm:$0xff] %v234_v29 }
 0x140   :  { %v235_v30 = vpop.f32.mrf.mxu1 }
 0x141   :  { %v236_v31 = vadd.f32 %v349_v27, %v235_v30 }
 0x143   :  { %239 = vst [vmem:[#allocation8 + $0x8] sm:$0xff] %v236_v31 }
 0x144   :  { %252 = dma.vmem_to_hbm [thread:$0]  %s245_s14, 256, %s247_s2, [#allocation4], %s456_s30, %s456_s30, %s457_s6  }
 0x145   :  { %450 = dma.done.wait [#allocation4], 256  }
 0x146   :  { %451 = vsyncadd [#allocation4], 4294967040 }
 0x147   :  { %257 = vsyncpa [#allocation3], 1 }
 0x148   :  { %258 = vsyncpa [#allocation6], 1 }
 0x149   :  { %259 = vsyncpa [#allocation4], 1 }

</bundles_post_ra>
